<compile_context>
chip_gen: v5e
topology: v5e:2x2
jax: 0.10.0
libtpu: 0.0.40
codegen_flags: <defaults>
</compile_context>

<pallas_src>
import jax
import jax.numpy as jnp
from jax.experimental import pallas as pl
from jax.experimental.pallas import tpu as pltpu


def _round_up(x, m):
    return (x + m - 1) // m * m


def _pick_row_tile(Ho, W, Cin, itemsize, budget_bytes=2 * 1024 * 1024):
    """Largest divisor TR of Ho whose input block (2*TR, W/2, 2*Cin) fits budget."""
    best = 1
    for tr in range(1, Ho + 1):
        if Ho % tr:
            continue
        if 2 * tr * W * Cin * itemsize <= budget_bytes:
            best = tr
    return best


def transition_kernel(x_ref, scale_ref, shift_ref, w_ref, o_ref):
    # x_ref     : (2*TR, Wo, 2*Cin)  two input rows per output row; the two
    #                                columns of each pool window are adjacent
    #                                Cin-sized groups on the lane axis.
    # scale_ref : (1, 2*Cin)         folded BN scale, tiled twice
    # shift_ref : (1, 2*Cin)         folded BN shift, tiled twice
    # w_ref     : (Cin, Coutp)       1x1 conv weight (transposed, *0.25, padded)
    # o_ref     : (TR, Wo, Coutp)
    cin = w_ref.shape[0]

    # BN (folded, inference) + ReLU in f32 on the VPU.
    y = jnp.maximum(x_ref[...] * scale_ref[0] + shift_ref[0], 0.0)

    # 2x2 average pool (the 1/4 is folded into the weight):
    #   horizontal pair -> adjacent Cin-groups on the lane axis
    col = y[:, :, :cin] + y[:, :, cin:]                    # (2*TR, Wo, Cin)
    #   vertical pair -> adjacent rows on the leading (batch) axis, free split
    two_tr, wo, _ = col.shape
    tr = two_tr // 2
    colr = col.reshape(tr, 2, wo, cin)
    pooled = colr[:, 0] + colr[:, 1]                       # (TR, Wo, Cin)

    # 1x1 conv == channel matmul on the MXU, f32 accumulation.
    z = jnp.dot(pooled.reshape(tr * wo, cin).astype(w_ref.dtype), w_ref[...],
                preferred_element_type=jnp.float32)        # (TR*Wo, Coutp)
    o_ref[...] = z.reshape(tr, wo, -1).astype(o_ref.dtype)


def transition_forward(x_nchw, conv_w, gamma, beta, run_mean, run_var, eps=1e-5):
    N, Cin, H, W = x_nchw.shape
    Cout = conv_w.shape[0]
    assert H % 2 == 0 and W % 2 == 0, "avg_pool2d(2) needs even H and W"
    Ho, Wo = H // 2, W // 2
    dtype = x_nchw.dtype

    # ---- BN constant folding (inference-mode, running statistics). ----------
    # TODO(synk): training-mode BN (batch statistics) would need an extra global
    # reduction pass; inference-mode running-stat BN is implemented.
    inv_std = jax.lax.rsqrt(run_var.astype(jnp.float32) + eps)
    scale = gamma.astype(jnp.float32) * inv_std
    shift = beta.astype(jnp.float32) - run_mean.astype(jnp.float32) * scale
    scale2 = jnp.tile(scale, 2).reshape(1, 2 * Cin)
    shift2 = jnp.tile(shift, 2).reshape(1, 2 * Cin)

    # ---- 1x1 conv weight: (Cout,Cin,1,1) -> (Cin,Cout); fold the 1/4 pooling
    #      factor; pad Cout to a lane-dense multiple of 128. ------------------
    Coutp = _round_up(Cout, 128)
    w = conv_w.reshape(Cout, Cin).T.astype(jnp.float32) * 0.25
    if Coutp != Cout:
        w = jnp.pad(w, ((0, 0), (0, Coutp - Cout)))
    w = w.astype(dtype)           # bf16 weights iff activations are bf16

    # ---- layout: one NCHW->NHWC transpose (unavoidable), then a *free*
    #      reshape that pairs the two columns of every 2x2 window on lanes. ---
    x = jnp.transpose(x_nchw, (0, 2, 3, 1)).reshape(N, H, Wo, 2 * Cin)

    TR = _pick_row_tile(Ho, W, Cin, jnp.dtype(dtype).itemsize)
    grid = (N, Ho // TR)

    out = pl.pallas_call(
        transition_kernel,
        out_shape=jax.ShapeDtypeStruct((N, Ho, Wo, Coutp), dtype),
        grid=grid,
        in_specs=[
            pl.BlockSpec((None, 2 * TR, Wo, 2 * Cin), lambda n, h: (n, h, 0, 0)),
            pl.BlockSpec((1, 2 * Cin), lambda n, h: (0, 0)),
            pl.BlockSpec((1, 2 * Cin), lambda n, h: (0, 0)),
            pl.BlockSpec((Cin, Coutp), lambda n, h: (0, 0)),
        ],
        out_specs=pl.BlockSpec((None, TR, Wo, Coutp), lambda n, h: (n, h, 0, 0)),
        compiler_params=pltpu.CompilerParams(
            dimension_semantics=("parallel", "parallel")),
    )(x, scale2, shift2, w)

    # Drop the Cout padding and go back to NCHW (output is ~8x smaller than x).
    return jnp.transpose(out[..., :Cout], (0, 3, 1, 2))


def transition_ref(x, conv_w, gamma, beta, mean, var, eps=1e-5):
    # Pure-JAX reference mirroring the PyTorch forward (inference-mode BN).
    xb = (x - mean[None, :, None, None]) * jax.lax.rsqrt(var[None, :, None, None] + eps)
    xb = xb * gamma[None, :, None, None] + beta[None, :, None, None]
    xr = jnp.maximum(xb, 0.0)
    w2 = conv_w.reshape(conv_w.shape[0], conv_w.shape[1])          # (Cout, Cin)
    z = jnp.einsum('nchw,oc->nohw', xr, w2)
    N, O, H, W = z.shape
    return z.reshape(N, O, H // 2, 2, W // 2, 2).mean(axis=(3, 5))


if __name__ == "__main__":
    key = jax.random.PRNGKey(0)
    kx, kw, kg, kb, km, kv = jax.random.split(key, 6)

    N, Cin, Cout, H, W = 2, 4, 2, 16, 16
    x = jax.random.normal(kx, (N, Cin, H, W), jnp.float32)
    conv_w = 0.5 * jax.random.normal(kw, (Cout, Cin, 1, 1), jnp.float32)
    gamma = 1.0 + 0.1 * jax.random.normal(kg, (Cin,), jnp.float32)
    beta = 0.1 * jax.random.normal(kb, (Cin,), jnp.float32)
    run_mean = 0.1 * jax.random.normal(km, (Cin,), jnp.float32)
    run_var = jnp.abs(jax.random.normal(kv, (Cin,), jnp.float32)) + 0.5

    out = transition_forward(x, conv_w, gamma, beta, run_mean, run_var)
    out = jax.block_until_ready(out)

    ref = transition_ref(x, conv_w, gamma, beta, run_mean, run_var)
    assert out.shape == (N, Cout, H // 2, W // 2), out.shape
    assert jnp.allclose(out, ref, atol=5e-5, rtol=5e-5), float(
        jnp.max(jnp.abs(out - ref)))
    print("KERNEL_OK")
</pallas_src>

<mosaic_0001>
module attributes {stable_mosaic.version = 11 : i64} {
  func.func @transition_kernel(%arg0: i32, %arg1: i32, %arg2: memref<1x16x8x8xf32, #tpu.memory_space<vmem>>, %arg3: memref<1x8xf32, #tpu.memory_space<vmem>>, %arg4: memref<1x8xf32, #tpu.memory_space<vmem>>, %arg5: memref<4x128xf32, #tpu.memory_space<vmem>>, %arg6: memref<1x8x8x128xf32, #tpu.memory_space<vmem>>) attributes {dimension_semantics = [#tpu.dimension_semantics<parallel>, #tpu.dimension_semantics<parallel>], iteration_bounds = array<i64: 2, 1>, scalar_prefetch = 0 : i64, scratch_operands = 0 : i64, tpu.core_type = #tpu.core_type<tc>, window_params = [{transform_indices = @transform_0, window_bounds = array<i64: 1, 16, 8, 8>}, {pipeline_mode = #tpu.pipeline_mode<synchronous>, transform_indices = @transform_1, window_bounds = array<i64: 1, 8>}, {pipeline_mode = #tpu.pipeline_mode<synchronous>, transform_indices = @transform_2, window_bounds = array<i64: 1, 8>}, {pipeline_mode = #tpu.pipeline_mode<synchronous>, transform_indices = @transform_3, window_bounds = array<i64: 4, 128>}, {transform_indices = @transform_4, window_bounds = array<i64: 1, 8, 8, 128>}]} {
    %c0 = arith.constant 0 : index
    %c0_0 = arith.constant 0 : index
    %c0_1 = arith.constant 0 : index
    %c0_2 = arith.constant 0 : index
    %0 = vector.load %arg2[%c0, %c0_0, %c0_1, %c0_2] : memref<1x16x8x8xf32, #tpu.memory_space<vmem>>, vector<1x16x8x8xf32>
    %1 = vector.shape_cast %0 : vector<1x16x8x8xf32> to vector<16x8x8xf32>
    %c0_3 = arith.constant 0 : index
    %c0_4 = arith.constant 0 : index
    %2 = vector.load %arg3[%c0_3, %c0_4] : memref<1x8xf32, #tpu.memory_space<vmem>>, vector<1x8xf32>
    %3 = vector.shape_cast %2 : vector<1x8xf32> to vector<8xf32>
    %4 = vector.shape_cast %3 : vector<8xf32> to vector<1x1x8xf32>
    %5 = vector.broadcast %4 : vector<1x1x8xf32> to vector<16x8x8xf32>
    %6 = arith.mulf %1, %5 : vector<16x8x8xf32>
    %c0_5 = arith.constant 0 : index
    %c0_6 = arith.constant 0 : index
    %7 = vector.load %arg4[%c0_5, %c0_6] : memref<1x8xf32, #tpu.memory_space<vmem>>, vector<1x8xf32>
    %8 = vector.shape_cast %7 : vector<1x8xf32> to vector<8xf32>
    %9 = vector.shape_cast %8 : vector<8xf32> to vector<1x1x8xf32>
    %10 = vector.broadcast %9 : vector<1x1x8xf32> to vector<16x8x8xf32>
    %11 = arith.addf %6, %10 : vector<16x8x8xf32>
    %cst = arith.constant 0.000000e+00 : f32
    %12 = vector.broadcast %cst : f32 to vector<16x8x8xf32>
    %13 = arith.maximumf %11, %12 : vector<16x8x8xf32>
    %14 = vector.extract_strided_slice %13 {offsets = [0, 0, 0], sizes = [16, 8, 4], strides = [1, 1, 1]} : vector<16x8x8xf32> to vector<16x8x4xf32>
    %15 = vector.extract_strided_slice %13 {offsets = [0, 0, 4], sizes = [16, 8, 4], strides = [1, 1, 1]} : vector<16x8x8xf32> to vector<16x8x4xf32>
    %16 = arith.addf %14, %15 : vector<16x8x4xf32>
    %17 = vector.shape_cast %16 : vector<16x8x4xf32> to vector<8x2x8x4xf32>
    %18 = vector.extract_strided_slice %17 {offsets = [0, 0, 0, 0], sizes = [8, 1, 8, 4], strides = [1, 1, 1, 1]} : vector<8x2x8x4xf32> to vector<8x1x8x4xf32>
    %19 = vector.shape_cast %18 : vector<8x1x8x4xf32> to vector<8x8x4xf32>
    %20 = vector.extract_strided_slice %17 {offsets = [0, 1, 0, 0], sizes = [8, 1, 8, 4], strides = [1, 1, 1, 1]} : vector<8x2x8x4xf32> to vector<8x1x8x4xf32>
    %21 = vector.shape_cast %20 : vector<8x1x8x4xf32> to vector<8x8x4xf32>
    %22 = arith.addf %19, %21 : vector<8x8x4xf32>
    %23 = vector.shape_cast %22 : vector<8x8x4xf32> to vector<64x4xf32>
    %c0_7 = arith.constant 0 : index
    %c0_8 = arith.constant 0 : index
    %24 = vector.load %arg5[%c0_7, %c0_8] : memref<4x128xf32, #tpu.memory_space<vmem>>, vector<4x128xf32>
    %cst_9 = arith.constant dense<0.000000e+00> : vector<64x128xf32>
    %25 = tpu.matmul %23, %24, %cst_9 {dimension_numbers = #tpu.dot_dimension_numbers<[1], [0], [0], [1], [0, 0, 1, 1], [], []>} : vector<64x4xf32>, vector<4x128xf32>, vector<64x128xf32> -> vector<64x128xf32>
    %26 = vector.shape_cast %25 : vector<64x128xf32> to vector<8x8x128xf32>
    %c0_10 = arith.constant 0 : index
    %c0_11 = arith.constant 0 : index
    %c0_12 = arith.constant 0 : index
    %c0_13 = arith.constant 0 : index
    %27 = vector.load %arg6[%c0_10, %c0_11, %c0_12, %c0_13] : memref<1x8x8x128xf32, #tpu.memory_space<vmem>>, vector<1x8x8x128xf32>
    %28 = vector.shape_cast %27 : vector<1x8x8x128xf32> to vector<8x8x128xf32>
    %29 = vector.shape_cast %26 : vector<8x8x128xf32> to vector<1x8x8x128xf32>
    tpu.vector_store %arg6[%c0_10, %c0_11, %c0_12, %c0_13], %29 {strides = array<i32>} : memref<1x8x8x128xf32, #tpu.memory_space<vmem>>, vector<1x8x8x128xf32>,
    return
  }
  func.func @transform_0(%arg0: i32, %arg1: i32) -> (i32, i32, i32, i32) {
    %c0_i32 = arith.constant 0 : i32
    %c0_i32_0 = arith.constant 0 : i32
    %c0_i32_1 = arith.constant 0 : i32
    return %arg0, %arg1, %c0_i32, %c0_i32_0 : i32, i32, i32, i32
  }
  func.func @transform_1(%arg0: i32, %arg1: i32) -> (i32, i32) {
    %c0_i32 = arith.constant 0 : i32
    %c0_i32_0 = arith.constant 0 : i32
    %c0_i32_1 = arith.constant 0 : i32
    return %c0_i32, %c0_i32_0 : i32, i32
  }
  func.func @transform_2(%arg0: i32, %arg1: i32) -> (i32, i32) {
    %c0_i32 = arith.constant 0 : i32
    %c0_i32_0 = arith.constant 0 : i32
    %c0_i32_1 = arith.constant 0 : i32
    return %c0_i32, %c0_i32_0 : i32, i32
  }
  func.func @transform_3(%arg0: i32, %arg1: i32) -> (i32, i32) {
    %c0_i32 = arith.constant 0 : i32
    %c0_i32_0 = arith.constant 0 : i32
    %c0_i32_1 = arith.constant 0 : i32
    return %c0_i32, %c0_i32_0 : i32, i32
  }
  func.func @transform_4(%arg0: i32, %arg1: i32) -> (i32, i32, i32, i32) {
    %c0_i32 = arith.constant 0 : i32
    %c0_i32_0 = arith.constant 0 : i32
    %c0_i32_1 = arith.constant 0 : i32
    return %arg0, %arg1, %c0_i32, %c0_i32_0 : i32, i32, i32, i32
  }
}

</mosaic_0001>

<bundles_post_ra>
// kernel: tpu_custom_call.1
= control target key start
LH: loop header
LB: loop body
LE: loop exit
PB: predicated region body
PF: predicated region fallthrough
CT: control target
= control target key end

     0   :  { %9 = vsyncpa [#allocation3], 0  ;;  %s1010_s0 = inlined_call_operand.vmem [shape: f32[2,16,8,8], index: 0, kind: input, shape index: {}]   ;;  %s1011_s1 = inlined_call_operand.vmem [shape: f32[1,8], index: 1, kind: input, shape index: {}]   ;;  %s1012_s2 = inlined_call_operand.vmem [shape: f32[1,8], index: 2, kind: input, shape index: {}]   ;;  %s1013_s3 = inlined_call_operand.vmem [shape: f32[4,128], index: 3, kind: input, shape index: {}]   ;;  %s1014_s4 = inlined_call_operand.hbm [shape: f32[2,8,8,128], index: 4, kind: output, shape index: {}]  }
   0x1   :  { %11 = vsyncpa [#allocation3 + $0x1], 0  ;;  %s758_s15 = smov 0   ;;  %s760_s16 = smov 0  }
   0x2   :  { %s762_s17 = smov 0   ;;  %s764_s18 = smov 0  }
   0x3   :  { %s766_s19 = smov 0   ;;  %s768_s20 = smov 0  }
   0x4 LB: > { %s563_s21 = sadd.s32 4294967295, %s728_s20   ;;  %s564_s22 = sadd.s32 4294967294, %s728_s20   ;;  %s728_s20 = sphi %s768_s20, %s17_s20   ;;  %s724_s19 = sphi %s766_s19, %s1021_s19   ;;  %s720_s18 = sphi %s764_s18, %s1020_s18   ;;  %s716_s17 = sphi %s762_s17, %s1019_s17   ;;  %s712_s16 = sphi %s760_s16, %s1018_s16   ;;  %s708_s15 = sphi %s758_s15, %s1017_s15  }
   0x5   : > { %s29_s23 = sadd.s32 1, %s724_s19  ;;  %s129_s24 = sadd.s32 1, %s716_s17 }
   0x6   : > { %p31_p0 = scmp.ge.s32.totalorder %s29_s23, 2  ;;  %p139_p1 = scmp.ne.s32.totalorder %s716_s17, %s712_s16 }
   0x7   : > { %p140_p2 = scmp.eq.s32.totalorder %s563_s21, 1  ;;  %p145_p3 = scmp.ne.s32.totalorder %s712_s16, %s708_s15 }
   0x8   : > { %s1023_s23 = smov (%p31_p0, %s29_s23), 0  ;;  %p146_p5 = scmp.eq.s32.totalorder %s564_s22, 1 }
   0x9   : > { %p798_p4 = por %p140_p2, %p139_p1  ;;  %s124_s26 = ssub.s32 %s724_s19, %s1023_s23 }
   0xa   : > { %p567_p6 = scmp.ge.s32.totalorder %s728_s20, 1  ;;  %p127_p7 = scmp.eq.s32.totalorder %s124_s26, 0 }
   0xb   : > { %p805_p8 = por %p146_p5, %p145_p3  ;;  %p186_p9 = scmp.lt.s32.totalorder %s728_s20, 3 }
   0xc   : > { %s811_s28 = scalar_select %p127_p7, %s716_s17, %s129_s24  }
   0xd   : > { %p187_p10 = pnand %p567_p6, %p186_p9 }
   0xe   : > { %p217_p11 = scmp.lt.s32.totalorder (!%p187_p10), %s720_s18, 1  ;;  %s730_s12 = smov (!%p187_p10), 124  }
   0xf   : > { %190 = sbr.rel (%p187_p10) target bundleno = 321 (0x141), region = 36  ;;  %s213_s21 = sand.u32 (!%p187_p10), 1, %s712_s16  }
  0x10   : > { %s568_s22 = sshll.u32 (!%p187_p10), %s213_s21, 6  ;;  %s586_s26 = sshll.u32 (!%p187_p10), %s720_s18, 6 }
  0x11   : > { %s215_s24 = scalar_lea.vmem (!%p187_p10), [#allocation2], %s568_s22  ;;  %s480_s5 = scalar_lea.hbm (!%p187_p10), %s1014_s4, %s586_s26 }
  0x12   : > { %s483_s7 = sshll.u32 (!%p187_p10), %s480_s5, 4  ;;  %s467_s8 = scalar_lea.sflag (!%p187_p10), [#allocation3], %s213_s21  ;;  %s484_s7 = int_to_ptr.hbm [resolvable:$true] %s483_s7 }
  0x14   : > { %s218_s29 = scalar_select %p217_p11, %s720_s18, 1  ;;  %v818_v0 = vld [vmem:[%s1011_s1] ss:$0 sm:$0xff]  ;;  %vm413_vm0 = vcmask 1043456   ;;  %vm388_vm1 = vcmask 31744  }
  0x15   : > { %v828_v1 = vld [vmem:[%s1012_s2] ss:$0 sm:$0xff] }
  0x16   : > { %s585_s6 = sshll.u32 %s218_s29, 7 }
  0x17   : > { %s823_s9 = scalar_lea.vmem %s1010_s0, %s585_s6  ;;  %s481_s6 = sshll.u32 %s215_s24, 4  ;;  %s482_s6 = int_to_ptr.vmem [resolvable:$true] %s481_s6 }
  0x18   : > { %v239_v2 = vld [vmem:[%s823_s9 + $0x60] sm:$0xff]  ;;  %v240_v4 = vld [vmem:[%s823_s9 + $0x68] sm:$0xff]  ;;  %v237_v31 = vld [vmem:[%s823_s9 + $0x50] sm:$0xff] }
  0x19   : > { %v235_v3 = vld [vmem:[%s823_s9 + $0x40] sm:$0xff]  ;;  %v259_v5 = vmul.f32 %v818_v0, %v239_v2  ;;  %v236_v7 = vld [vmem:[%s823_s9 + $0x48] sm:$0xff]  ;;  %v260_v10 = vmul.f32 %v818_v0, %v240_v4  ;;  %v241_v32 = vld [vmem:[%s823_s9 + $0x70] sm:$0xff]  ;;  %v257_v35 = vmul.f32 %v818_v0, %v237_v31 }
  0x1a   : > { %v255_v6 = vmul.f32 %v818_v0, %v235_v3  ;;  %v256_v11 = vmul.f32 %v818_v0, %v236_v7  ;;  %v227_v12 = vld [vmem:[%s823_s9] sm:$0xff]  ;;  %v228_v15 = vld [vmem:[%s823_s9 + $0x8] sm:$0xff]  ;;  %v238_v33 = vld [vmem:[%s823_s9 + $0x58] sm:$0xff]  ;;  %v261_v38 = vmul.f32 %v818_v0, %v241_v32 }
  0x1b   : > { %v837_v8 = vadd.f32 %v828_v1, %v259_v5  ;;  %v855_v16 = vadd.f32 %v828_v1, %v260_v10  ;;  %v232_v18 = vld [vmem:[%s823_s9 + $0x28] sm:$0xff]  ;;  %v247_v19 = vmul.f32 %v818_v0, %v227_v12  ;;  %v231_v20 = vld [vmem:[%s823_s9 + $0x20] sm:$0xff]  ;;  %v248_v22 = vmul.f32 %v818_v0, %v228_v15  ;;  %v242_v41 = vld [vmem:[%s823_s9 + $0x78] sm:$0xff] }
  0x1c   : > { %v840_v9 = vadd.f32 %v828_v1, %v255_v6  ;;  %v858_v17 = vadd.f32 %v828_v1, %v256_v11  ;;  %v252_v23 = vmul.f32 %v818_v0, %v232_v18  ;;  %v251_v26 = vmul.f32 %v818_v0, %v231_v20  ;;  %v230_v44 = vld [vmem:[%s823_s9 + $0x18] sm:$0xff]  ;;  %v229_v45 = vld [vmem:[%s823_s9 + $0x10] sm:$0xff] }
  0x1d   : > { %v295_v13 = vmax.f32 %v837_v8, 0.0  ;;  %v864_v21 = vadd.f32 %v828_v1, %v247_v19  ;;  %v296_v24 = vmax.f32 %v855_v16, 0.0  ;;  %v268_v28 = vadd.f32 %v828_v1, %v248_v22  ;;  %v233_v53 = vld [vmem:[%s823_s9 + $0x30] sm:$0xff]  ;;  %v234_v56 = vld [vmem:[%s823_s9 + $0x38] sm:$0xff]  ;;  %s664_s9 = sshra.s32 %s484_s7, 4  ;;  %s665_s9 = int_to_ptr.hbm [resolvable:$true] %s664_s9 }
  0x1e   : > { %v291_v14 = vmax.f32 %v840_v9, 0.0  ;;  %v292_v25 = vmax.f32 %v858_v17, 0.0  ;;  %v881_v29 = vadd.f32 %v828_v1, %v252_v23  ;;  %v884_v30 = vadd.f32 %v828_v1, %v251_v26  ;;  %s666_s10 = scalar_lea.hbm %s665_s9, 64  ;;  %p671_p1 = scmp.lt.s32.totalorder %s665_s9, %s1014_s4 }
  0x1f   : > { %339 = vrot.lane.b32.xlu1 %v295_v13, %s730_s12  ;;  %v283_v27 = vmax.f32 %v864_v21, 0.0  ;;  %v284_v34 = vmax.f32 %v268_v28, 0.0  ;;  %v258_v39 = vmul.f32 %v818_v0, %v238_v33  ;;  %v896_v40 = vadd.f32 %v828_v1, %v257_v35  ;;  %p667_p12 = scmp.ne.s32.totalorder %s665_s9, %s666_s10 }
  0x20   : > { %331 = vrot.lane.b32.xlu0 %v291_v14, %s730_s12  ;;  %v288_v36 = vmax.f32 %v881_v29, 0.0  ;;  %v287_v37 = vmax.f32 %v884_v30, 0.0  ;;  %v906_v42 = vadd.f32 %v828_v1, %v261_v38  ;;  %v262_v47 = vmul.f32 %v818_v0, %v242_v41 }
  0x21   : > { %315 = vrot.lane.b32.xlu2 %v283_v27, %s730_s12  ;;  %v909_v43 = vadd.f32 %v828_v1, %v258_v39  ;;  %v293_v46 = vmax.f32 %v896_v40, 0.0  ;;  %v250_v50 = vmul.f32 %v818_v0, %v230_v44  ;;  %v249_v51 = vmul.f32 %v818_v0, %v229_v45  ;;  %p668_p13 = pnand %p667_p12, %p798_p4 }
  0x22   : > { %v297_v48 = vmax.f32 %v906_v42, 0.0  ;;  %v282_v52 = vadd.f32 %v828_v1, %v262_v47  ;;  %v253_v58 = vmul.f32 %v818_v0, %v233_v53  ;;  %v254_v61 = vmul.f32 %v818_v0, %v234_v56  ;;  %v387_v0 = vld [vmem:[%s1013_s3] sm:$0xf] }
  0x23   : > { %v294_v49 = vmax.f32 %v909_v43, 0.0  ;;  %v929_v54 = vadd.f32 %v828_v1, %v250_v50  ;;  %v932_v55 = vadd.f32 %v828_v1, %v249_v51  ;;  %571 = vmatpush.msk.msra.mxu0 %vm413_vm0, %v387_v0  ;;  %588 = vmatpush.msk.msra.mxu2 %vm413_vm0, %v387_v0  ;;  %p669_p0 = pneg %p668_p13 }
  0x24   : > { %v298_v57 = vmax.f32 %v282_v52, 0.0  ;;  %v273_v62 = vadd.f32 %v828_v1, %v253_v58  ;;  %v274_v63 = vadd.f32 %v828_v1, %v254_v61  ;;  %589 = vmatpush.msk.msra.mxu3 %vm413_vm0, %v387_v0  ;;  %587 = vmatpush.msk.msra.mxu1 %vm413_vm0, %v387_v0 }
  0x25   : > { %v286_v59 = vmax.f32 %v929_v54, 0.0  ;;  %v285_v60 = vmax.f32 %v932_v55, 0.0 }
  0x26   : > { %v289_v2 = vmax.f32 %v273_v62, 0.0  ;;  %v290_v3 = vmax.f32 %v274_v63, 0.0 }
  0x27   : > { %341 = vrot.lane.b32.xlu1 %v296_v24, %s730_s12 }
  0x28   : > { %333 = vrot.lane.b32.xlu0 %v292_v25, %s730_s12 }
  0x29   : > { %317 = vrot.lane.b32.xlu2 %v284_v34, %s730_s12 }
  0x2f   : > { %325 = vrot.lane.b32.xlu1 %v288_v36, %s730_s12 }
  0x30   : > { %323 = vrot.lane.b32.xlu0 %v287_v37, %s730_s12 }
  0x31   : > { %335 = vrot.lane.b32.xlu2 %v293_v46, %s730_s12 }
  0x37   : > { %343 = vrot.lane.b32.xlu1 %v297_v48, %s730_s12 }
  0x38   : > { %337 = vrot.lane.b32.xlu0 %v294_v49, %s730_s12 }
  0x39   : > { %345 = vrot.lane.b32.xlu2 %v298_v57, %s730_s12 }
  0x3f   : > { %321 = vrot.lane.b32.xlu1 %v286_v59, %s730_s12 }
  0x40   : > { %319 = vrot.lane.b32.xlu0 %v285_v60, %s730_s12 }
  0x41   : > { %327 = vrot.lane.b32.xlu2 %v289_v2, %s730_s12 }
  0x48   : > { %329 = vrot.lane.b32.xlu0 %v290_v3, %s730_s12  ;;  %s670_s12 = scalar_lea.hbm %s1014_s4, 128 }
  0x49   : > { %p672_p2 = scmp.lt.s32.totalorder %s670_s12, %s666_s10 }
  0x4b   : > { %p673_p3 = por %p672_p2, %p671_p1 }
  0x4d   : > { %p674_p5 = pnand %p673_p3, %p669_p0 }
  0x7b   : > { %v316_v4 = vpop.permute.xlu2 %315 }
  0x7c   : > { %v363_v5 = vadd.f32 %v316_v4, %v283_v27 }
  0x83   : > { %v318_v6 = vpop.permute.xlu2 %317 }
  0x84   : > { %v364_v7 = vadd.f32 %v318_v6, %v284_v34 }
  0x86   : > { %v379_v1 = vadd.f32 %v364_v7, %v363_v5 }
  0x88   : > { %572 = vmatmul.msk.f32.vlgmr.msra.gmra.mxu0 %vm388_vm1, %v379_v1 }
  0x8b   : > { %v336_v22 = vpop.permute.xlu2 %335 }
  0x8c   : > { %v373_v17 = vadd.f32 %v336_v22, %v293_v46 }
  0x91   : > { %v340_v10 = vpop.permute.xlu1 %339 }
  0x92   : > { %v332_v11 = vpop.permute.xlu0 %331  ;;  %v375_v12 = vadd.f32 %v340_v10, %v295_v13 }
  0x93   : > { %v371_v19 = vadd.f32 %v332_v11, %v291_v14  ;;  %v346_v16 = vpop.permute.xlu2 %345 }
  0x99   : > { %v342_v15 = vpop.permute.xlu1 %341 }
  0x9a   : > { %v334_v18 = vpop.permute.xlu0 %333  ;;  %v376_v20 = vadd.f32 %v342_v15, %v296_v24  ;;  %v378_v24 = vadd.f32 %v346_v16, %v298_v57 }
  0x9b   : > { %v372_v21 = vadd.f32 %v334_v18, %v292_v25  ;;  %v328_v38 = vpop.permute.xlu2 %327 }
  0x9c   : > { %v385_v23 = vadd.f32 %v376_v20, %v375_v12  ;;  %v369_v39 = vadd.f32 %v328_v38, %v289_v2 }
  0x9d   : > { %v383_v26 = vadd.f32 %v372_v21, %v371_v19 }
  0x9e   : > { %578 = vmatmul.msk.f32.vlgmr.msra.gmra.mxu3 %vm388_vm1, %v385_v23 }
  0x9f   : > { %576 = vmatmul.msk.f32.vlgmr.msra.gmra.mxu2 %vm388_vm1, %v383_v26 }
  0xa1   : > { %v326_v8 = vpop.permute.xlu1 %325 }
  0xa2   : > { %v324_v13 = vpop.permute.xlu0 %323  ;;  %v368_v27 = vadd.f32 %v326_v8, %v288_v36 }
  0xa3   : > { %v367_v9 = vadd.f32 %v324_v13, %v287_v37 }
  0xa5   : > { %v381_v14 = vadd.f32 %v368_v27, %v367_v9 }
  0xa7   : > { %574 = vmatmul.msk.f32.vlgmr.msra.gmra.mxu1 %vm388_vm1, %v381_v14 }
  0xa9   : > { %v344_v25 = vpop.permute.xlu1 %343 }
  0xaa   : > { %v338_v28 = vpop.permute.xlu0 %337  ;;  %v377_v31 = vadd.f32 %v344_v25, %v297_v48 }
  0xab   : > { %v374_v32 = vadd.f32 %v338_v28, %v294_v49 }
  0xac   : > { %v386_v29 = vadd.f32 %v378_v24, %v377_v31 }
  0xad   : > { %v384_v33 = vadd.f32 %v374_v32, %v373_v17 }
  0xae   : > { %579 = vmatmul.msk.f32.gmra.mxu3 %vm388_vm1, %v386_v29 }
  0xaf   : > { %577 = vmatmul.msk.f32.gmra.mxu2 %vm388_vm1, %v384_v33 }
  0xb1   : > { %v322_v30 = vpop.permute.xlu1 %321 }
  0xb2   : > { %v320_v34 = vpop.permute.xlu0 %319  ;;  %v366_v35 = vadd.f32 %v322_v30, %v286_v59 }
  0xb3   : > { %v365_v36 = vadd.f32 %v320_v34, %v285_v60 }
  0xb5   : > { %v380_v37 = vadd.f32 %v366_v35, %v365_v36 }
  0xb7   : > { %573 = vmatmul.msk.f32.gmra.mxu0 %vm388_vm1, %v380_v37 }
  0xba   : > { %v330_v40 = vpop.permute.xlu0 %329 }
  0xbb   : > { %v370_v41 = vadd.f32 %v330_v40, %v290_v3 }
  0xbd   : > { %v382_v42 = vadd.f32 %v370_v41, %v369_v39 }
  0xbf   : > { %575 = vmatmul.msk.f32.gmra.mxu1 %vm388_vm1, %v382_v42 }
 0x105   : > { %v434_v43 = vpop.f32.mrf.mxu0 }
 0x106   : > { %458 = vst [vmem:[%s215_s24] sm:$0xff] %v434_v43 }
 0x121   : > { %v452_v45 = vpop.f32.mrf.mxu3 }
 0x122   : > { %v446_v44 = vpop.f32.mrf.mxu2  ;;  %464 = vst [vmem:[%s215_s24 + $0x30] sm:$0xff] %v452_v45 }
 0x123   : > { %462 = vst [vmem:[%s215_s24 + $0x20] sm:$0xff] %v446_v44 }
 0x124   : > { %v440_v46 = vpop.f32.mrf.mxu1 }
 0x125   : > { %460 = vst [vmem:[%s215_s24 + $0x10] sm:$0xff] %v440_v46 }
 0x131   : > { %v455_v48 = vpop.f32.mrf.mxu3 }
 0x132   : > { %v449_v47 = vpop.f32.mrf.mxu2  ;;  %465 = vst [vmem:[%s215_s24 + $0x38] sm:$0xff] %v455_v48 }
 0x133   : > { %463 = vst [vmem:[%s215_s24 + $0x28] sm:$0xff] %v449_v47 }
 0x134   : > { %v437_v49 = vpop.f32.mrf.mxu0 }
 0x135   : > { %459 = vst [vmem:[%s215_s24 + $0x8] sm:$0xff] %v437_v49 }
 0x13c   : > { %v443_v50 = vpop.f32.mrf.mxu1 }
 0x13d   : > { %461 = vst [vmem:[%s215_s24 + $0x18] sm:$0xff] %v443_v50 }
 0x13e   : > { %677 = shalt.err (!%p674_p5)
}
 0x13f   : > { %s731_s21 = smov 128   ;;  %s732_s22 = smov 8  }
 0x140   : > { %590 = dma.vmem_to_hbm [thread:$0]  (%p798_p4), %s482_s6, 1024, %s484_s7, %s467_s8, %s731_s21, %s731_s21, %s732_s22  }
 0x141 PF: > { %p596_p6 = scmp.ge.s32.totalorder %s728_s20, 2  ;;  %s498_s24 = sand.u32 1, %s708_s15  }
 0x142   : > { %s499_s26 = scalar_lea.sflag [#allocation3], %s498_s24 }
 0x143   : > { %p593_p7 = pnand %p596_p6, %p805_p8 }
 0x145   : > { %p594_p9 = pneg %p593_p7 }
 0x147   : > { %703 = dma.done.wait (%p594_p9), %s499_s26, 1024  }
 0x148   : > { %705 = vsyncadd (%p594_p9), %s499_s26, 4294966272  ;;  %s17_s20 = sadd.s32 1, %s728_s20   ;;  %s1017_s15 = smov %s712_s16 }
 0x149   : > { %p14_p10 = scmp.ge.s32.totalorder %s17_s20, 4   ;;  %s1018_s16 = smov %s716_s17 }
 0x14a   : > { %s1019_s17 = smov %s811_s28  ;;  %s1020_s18 = smov %s724_s19 }
 0x14b   : > { %s1021_s19 = smov %s1023_s23  ;;  %16 = sbr.rel (!%p14_p10) target bundleno = 4 (0x4), region = 71 }
 0x150   :  { %505 = vsyncpa [#allocation3], 1 }
 0x151   :  { %507 = vsyncpa [#allocation3 + $0x1], 1 }

</bundles_post_ra>
